<compile_context>
chip_gen: v5e
topology: v5e:2x2
jax: 0.10.0
libtpu: 0.0.40
codegen_flags: <defaults>
</compile_context>

<pallas_src>
import functools
import math

import jax
import jax.numpy as jnp
from jax.experimental import pallas as pl
from jax.experimental.pallas import tpu as pltpu


_LANE = 128
_SEG_MATRIX_BYTE_CAP = 4 * 1024 * 1024   # per one-hot matrix; gates the fold


def _round_up(n: int, m: int) -> int:
    return ((n + m - 1) // m) * m


def _vmem_config():
    """(vmem_limit_bytes, live-tile budget bytes) — generation aware."""
    cap = None
    try:
        cap = getattr(pltpu.get_tpu_info(), "vmem_capacity_bytes", None)
    except Exception:
        cap = None
    if cap is None:
        cap = 64 * 1024 * 1024                      # conservative (v7x-sized)
    if cap >= 96 * 1024 * 1024:                     # v5e / v6e: 128 MiB VMEM
        return 64 * 1024 * 1024, 24 * 1024 * 1024
    return 32 * 1024 * 1024, 12 * 1024 * 1024       # v7x: 64 MiB VMEM


def _layernorm_kernel(*refs, eps, seg_size, num_segs, has_affine):
    """Normalize `num_segs` segments of `seg_size` lanes per row (two-pass).

    refs (inputs..., output):
      x_ref: (T, W) I/O dtype, W = num_segs * seg_size (lane dense).
      m_ref/mt_ref (only if num_segs > 1): (W, G) / (G, W) f32 one-hot segment
        matrices, resident constants.
      w_ref/b_ref (only if has_affine): (1, W) f32, resident constants.
      o_ref: (T, W) I/O dtype.
    """
    if num_segs == 1:
        if has_affine:
            x_ref, w_ref, b_ref, o_ref = refs
        else:
            x_ref, o_ref = refs
            w_ref = b_ref = None
        m_ref = mt_ref = None
    else:
        if has_affine:
            x_ref, m_ref, mt_ref, w_ref, b_ref, o_ref = refs
        else:
            x_ref, m_ref, mt_ref, o_ref = refs
            w_ref = b_ref = None

    x = x_ref[...].astype(jnp.float32)
    inv_n = 1.0 / float(seg_size)

    if num_segs == 1:
        # Whole lane axis is one LayerNorm row: plain XLU reductions.
        mean = jnp.sum(x, axis=-1, keepdims=True) * inv_n           # (T, 1)
        d = x - mean
        var = jnp.sum(d * d, axis=-1, keepdims=True) * inv_n        # (T, 1)
        inv_std = jax.lax.rsqrt(var + eps)                          # compact EUP
        y = d * inv_std
    else:
        # Segment sums / broadcasts via the (otherwise idle) MXU.
        m = m_ref[...]                                              # (W, G)
        mt = mt_ref[...]                                            # (G, W)
        seg_mean = jnp.dot(x, m, preferred_element_type=jnp.float32) * inv_n   # (T, G)
        mean_b = jnp.dot(seg_mean, mt, preferred_element_type=jnp.float32)     # (T, W)
        d = x - mean_b
        seg_var = jnp.dot(d * d, m, preferred_element_type=jnp.float32) * inv_n  # (T, G)
        seg_inv_std = jax.lax.rsqrt(seg_var + eps)                  # compact EUP
        inv_std_b = jnp.dot(seg_inv_std, mt, preferred_element_type=jnp.float32)  # (T, W)
        y = d * inv_std_b

    if has_affine:
        y = y * w_ref[...] + b_ref[...]
    o_ref[...] = y.astype(o_ref.dtype)


def _pick_tile_rows(rows: int, width: int, itemsize: int, num_segs: int,
                    has_affine: bool, budget: int,
                    override: int | None = None) -> int:
    """Row-tile size: VMEM-budgeted (I/O + f32 temps + resident constants),
    sublane aligned, targeting >=8 grid steps with >=512-row tiles when the
    problem permits."""
    sub = {4: 8, 2: 16, 1: 32}.get(itemsize, 8)     # sublane packing of I/O dtype
    if rows < sub:
        return rows                                  # full-dim block (allowed)
    max_aligned = (rows // sub) * sub

    if override is not None:
        t = max(sub, (min(int(override), rows) // sub) * sub)
        return min(t, max_aligned)

    # Live bytes per tile row: double-buffered in+out I/O plus f32 temporaries
    # (x upcast, d, y for the unfolded path; + broadcast mean/inv_std folded).
    io_per_row = 2 * 2 * width * itemsize
    k_tmp = 3 if num_segs == 1 else 5
    per_row = io_per_row + k_tmp * width * 4

    # Resident constants (constant index_map; conservatively counted x2).
    resident = 0
    if has_affine:
        resident += 2 * (2 * width * 4)                      # w + b
    if num_segs > 1:
        resident += 2 * (2 * width * num_segs * 4)           # M + M.T

    avail = max(budget - resident, per_row * sub)
    cap = max(sub, (avail // per_row) // sub * sub)

    rows_al = _round_up(rows, sub)
    if rows_al >= 8 * 512:
        t = _round_up(pl.cdiv(rows, 8), sub)     # >=8 steps, tiles >=512 rows
    elif rows_al >= 2 * 512:
        t = 512                                   # 2..8 steps of 512-row tiles
    elif rows_al > 2 * sub:
        t = _round_up(pl.cdiv(rows, 2), sub)      # at least 2 steps
    else:
        t = rows_al
    return max(sub, min(t, cap, max_aligned))


def layer_norm(x: jax.Array,
               weight: jax.Array | None = None,
               bias: jax.Array | None = None,
               eps: float = 1e-5,
               tile_rows: int | None = None) -> jax.Array:
    """LayerNorm over the trailing `weight.ndim` axes of x (last axis if None)."""
    if weight is not None:
        n_norm = weight.ndim
    elif bias is not None:
        n_norm = bias.ndim
    else:
        n_norm = 1
    assert x.ndim >= n_norm
    norm_shape = x.shape[-n_norm:]
    if weight is not None:
        assert weight.shape == norm_shape
    if bias is not None:
        assert bias.shape == norm_shape

    hidden = math.prod(norm_shape)
    rows = math.prod(x.shape[:-n_norm]) if x.ndim > n_norm else 1
    has_affine = (weight is not None) or (bias is not None)

    vmem_limit, tile_budget = _vmem_config()

    # Lane-dense folding: view `g` consecutive rows as one (g*hidden)-wide row
    # (pure row-major reshape, zero data movement) so every block's lane axis
    # is a multiple of 128 -> unmasked vector stores.
    g = 1
    if hidden % _LANE != 0:
        cand = _LANE // math.gcd(hidden, _LANE)
        seg_mat_bytes = (cand * hidden) * cand * 4          # one (W, G) f32 matrix
        if seg_mat_bytes <= min(_SEG_MATRIX_BYTE_CAP, vmem_limit // 8):
            g = cand
        # TODO(synk): pathological hidden (odd / huge fold) keeps the lane-sparse
        # path when the one-hot segment matrices would not fit comfortably in VMEM.
    width = g * hidden

    # Pad rows so the fold always divides evenly (padding stripped after).
    x2d = x.reshape(rows, hidden)
    pad = (-rows) % g
    if pad:
        x2d = jnp.concatenate([x2d, jnp.zeros((pad, hidden), x.dtype)], axis=0)
    rows_p = rows + pad
    rows_v = rows_p // g
    x2d = x2d.reshape(rows_v, width)

    itemsize = jnp.dtype(x.dtype).itemsize
    tr = _pick_tile_rows(rows_v, width, itemsize, g, has_affine,
                         tile_budget, tile_rows)
    grid = (pl.cdiv(rows_v, tr),)        # partial last tile handled by Pallas

    inputs = [x2d]
    in_specs = [pl.BlockSpec((tr, width), lambda i: (i, 0))]

    if g > 1:
        seg_ids = jnp.arange(width, dtype=jnp.int32) // hidden           # (W,)
        seg_m = (seg_ids[:, None] ==
                 jnp.arange(g, dtype=jnp.int32)[None, :]).astype(jnp.float32)  # (W, G)
        seg_mt = seg_m.T                                                  # (G, W)
        inputs += [seg_m, seg_mt]
        in_specs += [pl.BlockSpec((width, g), lambda i: (0, 0)),
                     pl.BlockSpec((g, width), lambda i: (0, 0))]

    if has_affine:
        w = (jnp.ones((hidden,), jnp.float32) if weight is None
             else weight.reshape(hidden).astype(jnp.float32))
        b = (jnp.zeros((hidden,), jnp.float32) if bias is None
             else bias.reshape(hidden).astype(jnp.float32))
        inputs += [jnp.tile(w, g).reshape(1, width),
                   jnp.tile(b, g).reshape(1, width)]
        in_specs += [pl.BlockSpec((1, width), lambda i: (0, 0)),
                     pl.BlockSpec((1, width), lambda i: (0, 0))]

    kernel = functools.partial(_layernorm_kernel, eps=float(eps),
                               seg_size=hidden, num_segs=g,
                               has_affine=has_affine)

    out2d = pl.pallas_call(
        kernel,
        out_shape=jax.ShapeDtypeStruct((rows_v, width), x.dtype),
        grid_spec=pltpu.PrefetchScalarGridSpec(
            num_scalar_prefetch=0,
            grid=grid,
            in_specs=in_specs,
            out_specs=pl.BlockSpec((tr, width), lambda i: (i, 0)),
        ),
        compiler_params=pltpu.CompilerParams(
            dimension_semantics=("parallel",),
            vmem_limit_bytes=vmem_limit),
    )(*inputs)

    out = out2d.reshape(rows_p, hidden)
    if pad:
        out = out[:rows]
    return out.reshape(x.shape)


def _reference(x, weight, bias, eps):
    xf = x.astype(jnp.float32)
    mean = jnp.mean(xf, axis=-1, keepdims=True)
    var = jnp.mean((xf - mean) ** 2, axis=-1, keepdims=True)
    y = (xf - mean) / jnp.sqrt(var + eps)
    if weight is not None:
        y = y * weight
    if bias is not None:
        y = y + bias
    return y


if __name__ == "__main__":
    key = jax.random.PRNGKey(0)
    eps = 1e-5

    # Module config: normalized_shape = (32,), elementwise_affine=True
    # (reset_parameters -> weight = ones, bias = zeros).
    batch, seq, hidden = 2, 8, 32
    k1, k2, k3, k4 = jax.random.split(key, 4)
    x = jax.random.normal(k1, (batch, seq, hidden), dtype=jnp.float32)
    weight = jnp.ones((hidden,), jnp.float32)
    bias = jnp.zeros((hidden,), jnp.float32)

    out = jax.block_until_ready(layer_norm(x, weight, bias, eps=eps))
    ref = _reference(x, weight, bias, eps)
    assert jnp.allclose(out, ref, atol=1e-5, rtol=1e-5), \
        "mismatch (hidden=32, MXU-folded path)"

    # Lane-dense hidden (multiple of 128) + non-divisible rows -> partial last
    # tile and a 2-step grid.
    x2 = jax.random.normal(k2, (3, 7, 256), dtype=jnp.float32)
    w2 = jnp.ones((256,), jnp.float32)
    b2 = jnp.zeros((256,), jnp.float32)
    out2 = jax.block_until_ready(layer_norm(x2, w2, b2, eps=eps))
    ref2 = _reference(x2, w2, b2, eps)
    assert jnp.allclose(out2, ref2, atol=1e-5, rtol=1e-5), "mismatch (hidden=256 path)"

    # bf16 I/O (f32 accumulation inside the kernel), fold factor g=2.
    x3 = jax.random.normal(k3, (2, 10, 64), dtype=jnp.bfloat16)
    w3 = jnp.ones((64,), jnp.bfloat16)
    b3 = jnp.zeros((64,), jnp.bfloat16)
    out3 = jax.block_until_ready(layer_norm(x3, w3, b3, eps=eps))
    ref3 = _reference(x3, w3.astype(jnp.float32), b3.astype(jnp.float32), eps)
    assert jnp.allclose(out3.astype(jnp.float32), ref3, atol=2e-2, rtol=2e-2), \
        "mismatch (bf16 path)"

    # elementwise_affine=False (no weight/bias inputs, affine math skipped),
    # with rows not divisible by the fold factor -> wrapper-side row pad.
    x4 = jax.random.normal(k4, (3, 5, 32), dtype=jnp.float32)
    out4 = jax.block_until_ready(layer_norm(x4, None, None, eps=eps))
    ref4 = _reference(x4, None, None, eps)
    assert jnp.allclose(out4, ref4, atol=1e-5, rtol=1e-5), "mismatch (no-affine path)"

    print("KERNEL_OK")
</pallas_src>

<mosaic_0001>
module attributes {stable_mosaic.version = 11 : i64} {
  func.func @_layernorm_kernel(%arg0: i32, %arg1: memref<4x128xf32, #tpu.memory_space<vmem>>, %arg2: memref<128x4xf32, #tpu.memory_space<vmem>>, %arg3: memref<4x128xf32, #tpu.memory_space<vmem>>, %arg4: memref<1x128xf32, #tpu.memory_space<vmem>>, %arg5: memref<1x128xf32, #tpu.memory_space<vmem>>, %arg6: memref<4x128xf32, #tpu.memory_space<vmem>>) attributes {dimension_semantics = [#tpu.dimension_semantics<parallel>], iteration_bounds = array<i64: 1>, scalar_prefetch = 0 : i64, scratch_operands = 0 : i64, tpu.core_type = #tpu.core_type<tc>, window_params = [{transform_indices = @transform_0, window_bounds = array<i64: 4, 128>}, {pipeline_mode = #tpu.pipeline_mode<synchronous>, transform_indices = @transform_1, window_bounds = array<i64: 128, 4>}, {pipeline_mode = #tpu.pipeline_mode<synchronous>, transform_indices = @transform_2, window_bounds = array<i64: 4, 128>}, {pipeline_mode = #tpu.pipeline_mode<synchronous>, transform_indices = @transform_3, window_bounds = array<i64: 1, 128>}, {pipeline_mode = #tpu.pipeline_mode<synchronous>, transform_indices = @transform_4, window_bounds = array<i64: 1, 128>}, {transform_indices = @transform_5, window_bounds = array<i64: 4, 128>}]} {
    %c0 = arith.constant 0 : index
    %c0_0 = arith.constant 0 : index
    %0 = vector.load %arg1[%c0, %c0_0] : memref<4x128xf32, #tpu.memory_space<vmem>>, vector<4x128xf32>
    %c0_1 = arith.constant 0 : index
    %c0_2 = arith.constant 0 : index
    %1 = vector.load %arg2[%c0_1, %c0_2] : memref<128x4xf32, #tpu.memory_space<vmem>>, vector<128x4xf32>
    %c0_3 = arith.constant 0 : index
    %c0_4 = arith.constant 0 : index
    %2 = vector.load %arg3[%c0_3, %c0_4] : memref<4x128xf32, #tpu.memory_space<vmem>>, vector<4x128xf32>
    %cst = arith.constant dense<0.000000e+00> : vector<4x4xf32>
    %3 = tpu.matmul %0, %1, %cst {dimension_numbers = #tpu.dot_dimension_numbers<[1], [0], [0], [1], [0, 0, 1, 1], [], []>} : vector<4x128xf32>, vector<128x4xf32>, vector<4x4xf32> -> vector<4x4xf32>
    %cst_5 = arith.constant 3.125000e-02 : f32
    %4 = vector.broadcast %cst_5 : f32 to vector<4x4xf32>
    %5 = arith.mulf %3, %4 : vector<4x4xf32>
    %cst_6 = arith.constant dense<0.000000e+00> : vector<4x128xf32>
    %6 = tpu.matmul %5, %2, %cst_6 {dimension_numbers = #tpu.dot_dimension_numbers<[1], [0], [0], [1], [0, 0, 1, 1], [], []>} : vector<4x4xf32>, vector<4x128xf32>, vector<4x128xf32> -> vector<4x128xf32>
    %7 = arith.subf %0, %6 : vector<4x128xf32>
    %8 = arith.mulf %7, %7 : vector<4x128xf32>
    %cst_7 = arith.constant dense<0.000000e+00> : vector<4x4xf32>
    %9 = tpu.matmul %8, %1, %cst_7 {dimension_numbers = #tpu.dot_dimension_numbers<[1], [0], [0], [1], [0, 0, 1, 1], [], []>} : vector<4x128xf32>, vector<128x4xf32>, vector<4x4xf32> -> vector<4x4xf32>
    %cst_8 = arith.constant 3.125000e-02 : f32
    %10 = vector.broadcast %cst_8 : f32 to vector<4x4xf32>
    %11 = arith.mulf %9, %10 : vector<4x4xf32>
    %cst_9 = arith.constant 9.99999974E-6 : f32
    %12 = vector.broadcast %cst_9 : f32 to vector<4x4xf32>
    %13 = arith.addf %11, %12 : vector<4x4xf32>
    %14 = math.rsqrt %13 : vector<4x4xf32>
    %cst_10 = arith.constant dense<0.000000e+00> : vector<4x128xf32>
    %15 = tpu.matmul %14, %2, %cst_10 {dimension_numbers = #tpu.dot_dimension_numbers<[1], [0], [0], [1], [0, 0, 1, 1], [], []>} : vector<4x4xf32>, vector<4x128xf32>, vector<4x128xf32> -> vector<4x128xf32>
    %16 = arith.mulf %7, %15 : vector<4x128xf32>
    %c0_11 = arith.constant 0 : index
    %c0_12 = arith.constant 0 : index
    %17 = vector.load %arg4[%c0_11, %c0_12] : memref<1x128xf32, #tpu.memory_space<vmem>>, vector<1x128xf32>
    %18 = vector.broadcast %17 : vector<1x128xf32> to vector<4x128xf32>
    %19 = arith.mulf %16, %18 : vector<4x128xf32>
    %c0_13 = arith.constant 0 : index
    %c0_14 = arith.constant 0 : index
    %20 = vector.load %arg5[%c0_13, %c0_14] : memref<1x128xf32, #tpu.memory_space<vmem>>, vector<1x128xf32>
    %21 = vector.broadcast %20 : vector<1x128xf32> to vector<4x128xf32>
    %22 = arith.addf %19, %21 : vector<4x128xf32>
    %c0_15 = arith.constant 0 : index
    %c0_16 = arith.constant 0 : index
    %23 = vector.load %arg6[%c0_15, %c0_16] : memref<4x128xf32, #tpu.memory_space<vmem>>, vector<4x128xf32>
    tpu.vector_store %arg6[%c0_15, %c0_16], %22 {strides = array<i32>} : memref<4x128xf32, #tpu.memory_space<vmem>>, vector<4x128xf32>,
    return
  }
  func.func @transform_0(%arg0: i32) -> (i32, i32) {
    %c0_i32 = arith.constant 0 : i32
    %c0_i32_0 = arith.constant 0 : i32
    return %arg0, %c0_i32 : i32, i32
  }
  func.func @transform_1(%arg0: i32) -> (i32, i32) {
    %c0_i32 = arith.constant 0 : i32
    %c0_i32_0 = arith.constant 0 : i32
    %c0_i32_1 = arith.constant 0 : i32
    return %c0_i32, %c0_i32_0 : i32, i32
  }
  func.func @transform_2(%arg0: i32) -> (i32, i32) {
    %c0_i32 = arith.constant 0 : i32
    %c0_i32_0 = arith.constant 0 : i32
    %c0_i32_1 = arith.constant 0 : i32
    return %c0_i32, %c0_i32_0 : i32, i32
  }
  func.func @transform_3(%arg0: i32) -> (i32, i32) {
    %c0_i32 = arith.constant 0 : i32
    %c0_i32_0 = arith.constant 0 : i32
    %c0_i32_1 = arith.constant 0 : i32
    return %c0_i32, %c0_i32_0 : i32, i32
  }
  func.func @transform_4(%arg0: i32) -> (i32, i32) {
    %c0_i32 = arith.constant 0 : i32
    %c0_i32_0 = arith.constant 0 : i32
    %c0_i32_1 = arith.constant 0 : i32
    return %c0_i32, %c0_i32_0 : i32, i32
  }
  func.func @transform_5(%arg0: i32) -> (i32, i32) {
    %c0_i32 = arith.constant 0 : i32
    %c0_i32_0 = arith.constant 0 : i32
    return %arg0, %c0_i32 : i32, i32
  }
}

</mosaic_0001>

<bundles_post_ra>
// kernel: tpu_custom_call.1
= control target key start
LH: loop header
LB: loop body
LE: loop exit
PB: predicated region body
PF: predicated region fallthrough
CT: control target
= control target key end

     0   :  { %s304_s0 = inlined_call_operand.vmem [shape: f32[4,128], index: 0, kind: input, shape index: {}]   ;;  %s305_s1 = inlined_call_operand.vmem [shape: f32[128,4], index: 1, kind: input, shape index: {}]   ;;  %s306_s2 = inlined_call_operand.vmem [shape: f32[4,128], index: 2, kind: input, shape index: {}]   ;;  %s307_s3 = inlined_call_operand.vmem [shape: f32[1,128], index: 3, kind: input, shape index: {}]   ;;  %s308_s4 = inlined_call_operand.vmem [shape: f32[1,128], index: 4, kind: input, shape index: {}]   ;;  %s309_s5 = inlined_call_operand.hbm [shape: f32[4,128], index: 5, kind: output, shape index: {}]  }
   0x1   :  { %v37_v0 = vld [vmem:[%s305_s1 + $0x78] sm:$0xff]  ;;  %v36_v1 = vld [vmem:[%s305_s1 + $0x70] sm:$0xff]  ;;  %v35_v2 = vld [vmem:[%s305_s1 + $0x68] sm:$0xff] }
   0x2   :  { %39 = vmatpush.msra.mxu0 %v37_v0  ;;  %90 = vmatpush.msra.mxu2 %v37_v0  ;;  %v34_v3 = vld [vmem:[%s305_s1 + $0x60] sm:$0xff]  ;;  %v33_v4 = vld [vmem:[%s305_s1 + $0x58] sm:$0xff] }
   0x4   :  { %40 = vmatpush.msra.mxu0 %v36_v1  ;;  %91 = vmatpush.msra.mxu2 %v36_v1 }
   0x6   :  { %41 = vmatpush.msra.mxu0 %v35_v2  ;;  %92 = vmatpush.msra.mxu2 %v35_v2 }
   0x7   :  { %10 = vsyncpa [#allocation3], 0  ;;  %v32_v5 = vld [vmem:[%s305_s1 + $0x50] sm:$0xff]  ;;  %v31_v6 = vld [vmem:[%s305_s1 + $0x48] sm:$0xff]  ;;  %vm64_vm0 = vcmask 1043456   ;;  %vm60_vm1 = vcmask 31744  }
   0x8   :  { %42 = vmatpush.msra.mxu0 %v34_v3  ;;  %93 = vmatpush.msra.mxu2 %v34_v3  ;;  %v30_v7 = vld [vmem:[%s305_s1 + $0x40] sm:$0xff]  ;;  %v29_v8 = vld [vmem:[%s305_s1 + $0x38] sm:$0xff]  ;;  %v28_v9 = vld [vmem:[%s305_s1 + $0x30] sm:$0xff]  ;;  %s208_s30 = smov [#allocation2]   ;;  %s164_s9 = sshll.u32 %s309_s5, 4  ;;  %s165_s9 = int_to_ptr.hbm [resolvable:$true] %s164_s9 }
   0x9   :  { %v27_v10 = vld [vmem:[%s305_s1 + $0x28] sm:$0xff]  ;;  %v26_v11 = vld [vmem:[%s305_s1 + $0x20] sm:$0xff]  ;;  %v25_v12 = vld [vmem:[%s305_s1 + $0x18] sm:$0xff]  ;;  %s162_s6 = sshll.u32 %s208_s30, 4  ;;  %s163_s6 = int_to_ptr.vmem [resolvable:$true] %s162_s6 }
   0xa   :  { %43 = vmatpush.msra.mxu0 %v33_v4  ;;  %94 = vmatpush.msra.mxu2 %v33_v4  ;;  %v24_v13 = vld [vmem:[%s305_s1 + $0x10] sm:$0xff]  ;;  %v23_v14 = vld [vmem:[%s305_s1 + $0x8] sm:$0xff]  ;;  %v22_v15 = vld [vmem:[%s305_s1] sm:$0xff] }
   0xb   :  { %v21_v16 = vld [vmem:[%s304_s0] sm:$0xf] }
   0xc   :  { %44 = vmatpush.msra.mxu0 %v32_v5  ;;  %95 = vmatpush.msra.mxu2 %v32_v5  ;;  %v38_v17 = vld [vmem:[%s306_s2] sm:$0xf] }
   0xd   :  { %173 = vmatpush.msk.msra.mxu1 %vm64_vm0, %v38_v17  ;;  %175 = vmatpush.msk.msra.mxu3 %vm64_vm0, %v38_v17  ;;  %v178_v33 = vld [vmem:[%s307_s3] ss:$0 sm:$0xff] }
   0xe   :  { %45 = vmatpush.msra.mxu0 %v31_v6  ;;  %96 = vmatpush.msra.mxu2 %v31_v6  ;;  %v179_v36 = vld [vmem:[%s308_s4] ss:$0 sm:$0xff] }
  0x10   :  { %46 = vmatpush.msra.mxu0 %v30_v7  ;;  %97 = vmatpush.msra.mxu2 %v30_v7 }
  0x12   :  { %47 = vmatpush.msra.mxu0 %v29_v8  ;;  %98 = vmatpush.msra.mxu2 %v29_v8 }
  0x14   :  { %48 = vmatpush.msra.mxu0 %v28_v9  ;;  %99 = vmatpush.msra.mxu2 %v28_v9 }
  0x16   :  { %49 = vmatpush.msra.mxu0 %v27_v10  ;;  %100 = vmatpush.msra.mxu2 %v27_v10 }
  0x18   :  { %50 = vmatpush.msra.mxu0 %v26_v11  ;;  %101 = vmatpush.msra.mxu2 %v26_v11 }
  0x1a   :  { %51 = vmatpush.msra.mxu0 %v25_v12  ;;  %102 = vmatpush.msra.mxu2 %v25_v12 }
  0x1c   :  { %52 = vmatpush.msra.mxu0 %v24_v13  ;;  %103 = vmatpush.msra.mxu2 %v24_v13 }
  0x1e   :  { %53 = vmatpush.msra.mxu0 %v23_v14  ;;  %104 = vmatpush.msra.mxu2 %v23_v14 }
  0x20   :  { %54 = vmatpush.msra.mxu0 %v22_v15  ;;  %105 = vmatpush.msra.mxu2 %v22_v15 }
  0x21   :  { %55 = vmatmul.f32.vlgmr.msra.gmra.mxu0 %v21_v16 }
  0x9e   :  { %v56_v18 = vpop.f32.mrf.mxu0 }
  0x9f   :  { %v59_v19 = vmul.f32 0.03125, %v56_v18 }
  0xa1   :  { %174 = vmatmul.msk.f32.vlgmr.msra.gmra.mxu1 %vm60_vm1, %v59_v19 }
 0x11e   :  { %v85_v20 = vpop.f32.mrf.mxu1 }
 0x11f   :  { %v88_v21 = vsub.f32 %v21_v16, %v85_v20 }
 0x121   :  { %v89_v22 = vmul.f32 %v88_v21, %v88_v21 }
 0x123   :  { %106 = vmatmul.f32.vlgmr.msra.gmra.mxu2 %v89_v22 }
 0x1a6   :  { %v107_v23 = vpop.f32.mrf.mxu2 }
 0x1a7   :  { %v110_v24 = vmul.f32 0.03125, %v107_v23 }
 0x1a9   :  { %v111_v25 = vadd.f32 1e-05, %v110_v24 }
 0x1ab   :  { %180 = vrsqrt.f32 %v111_v25  ;;  %vm118_vm3 = vweird.f32 %v111_v25 }
 0x1b1   :  { %v181_v26 = vpop.eup %180 }
 0x1b2   :  { %v113_v27 = vmul.f32 %v181_v26, %v111_v25  ;;  %vm119_vm2 = vweird.f32 %v181_v26 }
 0x1b3   :  { %vm120_vm4 = vmor %vm118_vm3, %vm119_vm2 }
 0x1b4   :  { %v114_v28 = vmul.f32 %v181_v26, %v113_v27 }
 0x1b6   :  { %v115_v29 = vmul.f32 0.5, %v114_v28 }
 0x1b8   :  { %v116_v30 = vsub.f32 1.5, %v115_v29 }
 0x1ba   :  { %v117_v31 = vmul.f32 %v181_v26, %v116_v30 }
 0x1bc   :  { %v121_v32 = vsel %vm120_vm4, %v181_v26, %v117_v31 }
 0x1bd   :  { %176 = vmatmul.msk.f32.vlgmr.msra.gmra.mxu3 %vm60_vm1, %v121_v32 }
 0x240   :  { %v142_v34 = vpop.f32.mrf.mxu3 }
 0x241   :  { %v145_v35 = vmul.f32 %v142_v34, %v88_v21 }
 0x243   :  { %v150_v37 = vmul.f32 %v178_v33, %v145_v35 }
 0x245   :  { %v155_v38 = vadd.f32 %v179_v36, %v150_v37 }
 0x247   :  { %156 = vst [vmem:[#allocation2] sm:$0xf] %v155_v38 }
 0x248   :  { %167 = dma.vmem_to_hbm [thread:$0]  %s163_s6, 64, %s165_s9, [#allocation3]  }
 0x249   :  { %206 = dma.done.wait [#allocation3], 64  }
 0x24a   :  { %207 = vsyncadd [#allocation3], 4294967232 }
 0x24b   :  { %172 = vsyncpa [#allocation3], 1 }

</bundles_post_ra>
